<compile_context>
chip_gen: v6e
topology: v6e:2x2x1
jax: 0.10.0
libtpu: 0.0.40
codegen_flags: <defaults>
</compile_context>

<pallas_src>
import functools

import jax
import jax.numpy as jnp
from jax.experimental import pallas as pl
from jax.experimental.pallas import tpu as pltpu

LANE = 128  # TPU lane width


def _round_up(x, m):
    return (x + m - 1) // m * m


def _choose_block_b(batch, feat):
    """Batch-tile rows: small batches pad minimally; large batches get big tiles
    but always >= 2 grid steps so v7x can use both TensorCores."""
    if batch < 256:
        tb = _round_up(max(batch, 16), 16)          # 16 = bf16 sublane multiple
    else:
        tb = min(1024, max(128, _round_up((batch + 1) // 2, 128)))
    # Keep the double-buffered f32 x tile comfortably inside the scoped VMEM limit.
    cap = max(16, ((4 * 1024 * 1024) // max(4 * feat, 1)) // 16 * 16)
    return max(16, min(tb, cap))


def mlp_kernel(x_ref, w1_ref, b1_ref, w2_ref, b2_ref, w3_ref, b3_ref,
               w4_ref, b4_ref, o_ref):
    # In-kernel cast: x arrives as f32 straight from HBM, becomes an MXU operand here.
    x = x_ref[...].astype(jnp.bfloat16)
    # Layer 1: (TB, D)bf16 @ (D, 256)bf16 -> f32 acc, + bias, ReLU
    h = jnp.dot(x, w1_ref[...], preferred_element_type=jnp.float32) + b1_ref[...]
    h = jnp.maximum(h, 0.0).astype(jnp.bfloat16)   # Dropout(0.5): identity in eval mode
    # Layer 2: (TB, 256) @ (256, 256)
    h = jnp.dot(h, w2_ref[...], preferred_element_type=jnp.float32) + b2_ref[...]
    h = jnp.maximum(h, 0.0).astype(jnp.bfloat16)   # Dropout(0.5): identity in eval mode
    # Layer 3: (TB, 256) @ (256, 128)
    h = jnp.dot(h, w3_ref[...], preferred_element_type=jnp.float32) + b3_ref[...]
    h = jnp.maximum(h, 0.0).astype(jnp.bfloat16)   # Dropout(0.5): identity in eval mode
    # Layer 4 (logits, lane-padded to 128 cols): (TB, 128) @ (128, CP) -> bf16 store
    o_ref[...] = (jnp.dot(h, w4_ref[...], preferred_element_type=jnp.float32)
                  + b4_ref[...]).astype(o_ref.dtype)


def prepare_params(params):
    """One-time packing (hoisted out of the per-call forward): bf16 weights,
    f32 biases, logit columns zero-padded to a lane-dense 128."""
    num_classes = params["w4"].shape[1]
    cp = _round_up(num_classes, LANE)
    packed = {
        "w1": params["w1"].astype(jnp.bfloat16),            # (D, 256) -- no K padding
        "b1": params["b1"].reshape(1, -1).astype(jnp.float32),
        "w2": params["w2"].astype(jnp.bfloat16),
        "b2": params["b2"].reshape(1, -1).astype(jnp.float32),
        "w3": params["w3"].astype(jnp.bfloat16),
        "b3": params["b3"].reshape(1, -1).astype(jnp.float32),
        "w4": jnp.zeros((params["w4"].shape[0], cp), jnp.bfloat16)
                 .at[:, :num_classes].set(params["w4"].astype(jnp.bfloat16)),
        "b4": jnp.zeros((1, cp), jnp.float32)
                 .at[:, :num_classes].set(params["b4"].reshape(1, -1).astype(jnp.float32)),
    }
    return packed


@functools.partial(jax.jit, static_argnames=("num_classes",))
def naive_classifier_forward(x, packed, *, num_classes):
    """x: (B, D) f32.  packed: output of prepare_params.  Returns (B, num_classes) bf16 logits."""
    B, D = x.shape
    CP = packed["w4"].shape[1]

    block_b = _choose_block_b(B, D)
    BP = _round_up(B, block_b)
    xp = x if BP == B else jnp.zeros((BP, D), x.dtype).at[:B].set(x)

    # Constant-index specs: weights/biases stay VMEM-resident across batch tiles.
    const = lambda arr: pl.BlockSpec(arr.shape, lambda i: (0, 0))

    out = pl.pallas_call(
        mlp_kernel,
        out_shape=jax.ShapeDtypeStruct((BP, CP), jnp.bfloat16),
        grid_spec=pltpu.PrefetchScalarGridSpec(
            num_scalar_prefetch=0,
            grid=(BP // block_b,),
            in_specs=[
                pl.BlockSpec((block_b, D), lambda i: (i, 0)),   # x: raw f32, tiled over batch
                const(packed["w1"]), const(packed["b1"]),
                const(packed["w2"]), const(packed["b2"]),
                const(packed["w3"]), const(packed["b3"]),
                const(packed["w4"]), const(packed["b4"]),
            ],
            out_specs=pl.BlockSpec((block_b, CP), lambda i: (i, 0)),
        ),
        compiler_params=pltpu.CompilerParams(
            dimension_semantics=("parallel",),      # v7x: shard batch tiles across both TCs
            vmem_limit_bytes=32 * 1024 * 1024,
        ),
    )(xp, packed["w1"], packed["b1"], packed["w2"], packed["b2"],
      packed["w3"], packed["b3"], packed["w4"], packed["b4"])

    # Rows B..BP / cols num_classes..CP are padding; slice them away.
    return out[:B, :num_classes]


def init_params(key, input_dim, num_classes=10):
    """Deterministic init; weights stored (in, out) -- transposed vs nn.Linear."""
    dims = [(input_dim, 256), (256, 256), (256, 128), (128, num_classes)]
    params = {}
    for idx, (din, dout) in enumerate(dims, start=1):
        key, kw, kb = jax.random.split(key, 3)
        bound = 1.0 / jnp.sqrt(din)  # nn.Linear default init range
        params[f"w{idx}"] = jax.random.uniform(kw, (din, dout), jnp.float32, -bound, bound)
        params[f"b{idx}"] = jax.random.uniform(kb, (1, dout), jnp.float32, -bound, bound)
    return params


def reference_forward(x, params):
    h = jnp.maximum(x @ params["w1"] + params["b1"], 0.0)
    h = jnp.maximum(h @ params["w2"] + params["b2"], 0.0)
    h = jnp.maximum(h @ params["w3"] + params["b3"], 0.0)
    return h @ params["w4"] + params["b4"]


if __name__ == "__main__":
    key = jax.random.PRNGKey(0)
    key, kx, kp = jax.random.split(key, 3)

    batch, input_dim, num_classes = 8, 32, 10
    x = jax.random.normal(kx, (batch, input_dim), jnp.float32)
    params = init_params(kp, input_dim, num_classes)

    packed = prepare_params(params)   # one-time packing, not per forward call

    out = naive_classifier_forward(x, packed, num_classes=num_classes)
    out = jax.block_until_ready(out)

    ref = reference_forward(x, params)
    assert out.shape == (batch, num_classes)
    # bf16 weights/activations/output (f32 accumulation) => loosened tolerance vs f32 reference.
    assert jnp.allclose(out.astype(jnp.float32), ref, atol=5e-2, rtol=5e-2), "mismatch vs reference"

    print("KERNEL_OK")
</pallas_src>

<mosaic_0001>
module attributes {stable_mosaic.version = 11 : i64} {
  func.func @mlp_kernel(%arg0: i32, %arg1: memref<16x32xf32, #tpu.memory_space<vmem>>, %arg2: memref<32x256xbf16, #tpu.memory_space<vmem>>, %arg3: memref<1x256xf32, #tpu.memory_space<vmem>>, %arg4: memref<256x256xbf16, #tpu.memory_space<vmem>>, %arg5: memref<1x256xf32, #tpu.memory_space<vmem>>, %arg6: memref<256x128xbf16, #tpu.memory_space<vmem>>, %arg7: memref<1x128xf32, #tpu.memory_space<vmem>>, %arg8: memref<128x128xbf16, #tpu.memory_space<vmem>>, %arg9: memref<1x128xf32, #tpu.memory_space<vmem>>, %arg10: memref<16x128xbf16, #tpu.memory_space<vmem>>) attributes {dimension_semantics = [#tpu.dimension_semantics<parallel>], iteration_bounds = array<i64: 1>, scalar_prefetch = 0 : i64, scratch_operands = 0 : i64, tpu.core_type = #tpu.core_type<tc>, window_params = [{transform_indices = @transform_0, window_bounds = array<i64: 16, 32>}, {pipeline_mode = #tpu.pipeline_mode<synchronous>, transform_indices = @transform_1, window_bounds = array<i64: 32, 256>}, {pipeline_mode = #tpu.pipeline_mode<synchronous>, transform_indices = @transform_2, window_bounds = array<i64: 1, 256>}, {pipeline_mode = #tpu.pipeline_mode<synchronous>, transform_indices = @transform_3, window_bounds = array<i64: 256, 256>}, {pipeline_mode = #tpu.pipeline_mode<synchronous>, transform_indices = @transform_4, window_bounds = array<i64: 1, 256>}, {pipeline_mode = #tpu.pipeline_mode<synchronous>, transform_indices = @transform_5, window_bounds = array<i64: 256, 128>}, {pipeline_mode = #tpu.pipeline_mode<synchronous>, transform_indices = @transform_6, window_bounds = array<i64: 1, 128>}, {pipeline_mode = #tpu.pipeline_mode<synchronous>, transform_indices = @transform_7, window_bounds = array<i64: 128, 128>}, {pipeline_mode = #tpu.pipeline_mode<synchronous>, transform_indices = @transform_8, window_bounds = array<i64: 1, 128>}, {transform_indices = @transform_9, window_bounds = array<i64: 16, 128>}]} {
    %c0 = arith.constant 0 : index
    %c0_0 = arith.constant 0 : index
    %0 = vector.load %arg1[%c0, %c0_0] : memref<16x32xf32, #tpu.memory_space<vmem>>, vector<16x32xf32>
    %1 = arith.truncf %0 : vector<16x32xf32> to vector<16x32xbf16>
    %c0_1 = arith.constant 0 : index
    %c0_2 = arith.constant 0 : index
    %2 = vector.load %arg2[%c0_1, %c0_2] : memref<32x256xbf16, #tpu.memory_space<vmem>>, vector<32x256xbf16>
    %cst = arith.constant dense<0.000000e+00> : vector<16x256xf32>
    %3 = tpu.matmul %1, %2, %cst {dimension_numbers = #tpu.dot_dimension_numbers<[1], [0], [0], [1], [0, 0, 1, 1], [], []>} : vector<16x32xbf16>, vector<32x256xbf16>, vector<16x256xf32> -> vector<16x256xf32>
    %c0_3 = arith.constant 0 : index
    %c0_4 = arith.constant 0 : index
    %4 = vector.load %arg3[%c0_3, %c0_4] : memref<1x256xf32, #tpu.memory_space<vmem>>, vector<1x256xf32>
    %5 = vector.broadcast %4 : vector<1x256xf32> to vector<16x256xf32>
    %6 = arith.addf %3, %5 : vector<16x256xf32>
    %cst_5 = arith.constant 0.000000e+00 : f32
    %7 = vector.broadcast %cst_5 : f32 to vector<16x256xf32>
    %8 = arith.maximumf %6, %7 : vector<16x256xf32>
    %9 = arith.truncf %8 : vector<16x256xf32> to vector<16x256xbf16>
    %c0_6 = arith.constant 0 : index
    %c0_7 = arith.constant 0 : index
    %10 = vector.load %arg4[%c0_6, %c0_7] : memref<256x256xbf16, #tpu.memory_space<vmem>>, vector<256x256xbf16>
    %cst_8 = arith.constant dense<0.000000e+00> : vector<16x256xf32>
    %11 = tpu.matmul %9, %10, %cst_8 {dimension_numbers = #tpu.dot_dimension_numbers<[1], [0], [0], [1], [0, 0, 1, 1], [], []>} : vector<16x256xbf16>, vector<256x256xbf16>, vector<16x256xf32> -> vector<16x256xf32>
    %c0_9 = arith.constant 0 : index
    %c0_10 = arith.constant 0 : index
    %12 = vector.load %arg5[%c0_9, %c0_10] : memref<1x256xf32, #tpu.memory_space<vmem>>, vector<1x256xf32>
    %13 = vector.broadcast %12 : vector<1x256xf32> to vector<16x256xf32>
    %14 = arith.addf %11, %13 : vector<16x256xf32>
    %cst_11 = arith.constant 0.000000e+00 : f32
    %15 = vector.broadcast %cst_11 : f32 to vector<16x256xf32>
    %16 = arith.maximumf %14, %15 : vector<16x256xf32>
    %17 = arith.truncf %16 : vector<16x256xf32> to vector<16x256xbf16>
    %c0_12 = arith.constant 0 : index
    %c0_13 = arith.constant 0 : index
    %18 = vector.load %arg6[%c0_12, %c0_13] : memref<256x128xbf16, #tpu.memory_space<vmem>>, vector<256x128xbf16>
    %cst_14 = arith.constant dense<0.000000e+00> : vector<16x128xf32>
    %19 = tpu.matmul %17, %18, %cst_14 {dimension_numbers = #tpu.dot_dimension_numbers<[1], [0], [0], [1], [0, 0, 1, 1], [], []>} : vector<16x256xbf16>, vector<256x128xbf16>, vector<16x128xf32> -> vector<16x128xf32>
    %c0_15 = arith.constant 0 : index
    %c0_16 = arith.constant 0 : index
    %20 = vector.load %arg7[%c0_15, %c0_16] : memref<1x128xf32, #tpu.memory_space<vmem>>, vector<1x128xf32>
    %21 = vector.broadcast %20 : vector<1x128xf32> to vector<16x128xf32>
    %22 = arith.addf %19, %21 : vector<16x128xf32>
    %cst_17 = arith.constant 0.000000e+00 : f32
    %23 = vector.broadcast %cst_17 : f32 to vector<16x128xf32>
    %24 = arith.maximumf %22, %23 : vector<16x128xf32>
    %25 = arith.truncf %24 : vector<16x128xf32> to vector<16x128xbf16>
    %c0_18 = arith.constant 0 : index
    %c0_19 = arith.constant 0 : index
    %26 = vector.load %arg8[%c0_18, %c0_19] : memref<128x128xbf16, #tpu.memory_space<vmem>>, vector<128x128xbf16>
    %cst_20 = arith.constant dense<0.000000e+00> : vector<16x128xf32>
    %27 = tpu.matmul %25, %26, %cst_20 {dimension_numbers = #tpu.dot_dimension_numbers<[1], [0], [0], [1], [0, 0, 1, 1], [], []>} : vector<16x128xbf16>, vector<128x128xbf16>, vector<16x128xf32> -> vector<16x128xf32>
    %c0_21 = arith.constant 0 : index
    %c0_22 = arith.constant 0 : index
    %28 = vector.load %arg9[%c0_21, %c0_22] : memref<1x128xf32, #tpu.memory_space<vmem>>, vector<1x128xf32>
    %29 = vector.broadcast %28 : vector<1x128xf32> to vector<16x128xf32>
    %30 = arith.addf %27, %29 : vector<16x128xf32>
    %31 = arith.truncf %30 : vector<16x128xf32> to vector<16x128xbf16>
    %c0_23 = arith.constant 0 : index
    %c0_24 = arith.constant 0 : index
    %32 = vector.load %arg10[%c0_23, %c0_24] : memref<16x128xbf16, #tpu.memory_space<vmem>>, vector<16x128xbf16>
    tpu.vector_store %arg10[%c0_23, %c0_24], %31 {strides = array<i32>} : memref<16x128xbf16, #tpu.memory_space<vmem>>, vector<16x128xbf16>,
    return
  }
  func.func @transform_0(%arg0: i32) -> (i32, i32) {
    %c0_i32 = arith.constant 0 : i32
    %c0_i32_0 = arith.constant 0 : i32
    return %arg0, %c0_i32 : i32, i32
  }
  func.func @transform_1(%arg0: i32) -> (i32, i32) {
    %c0_i32 = arith.constant 0 : i32
    %c0_i32_0 = arith.constant 0 : i32
    %c0_i32_1 = arith.constant 0 : i32
    return %c0_i32, %c0_i32_0 : i32, i32
  }
  func.func @transform_2(%arg0: i32) -> (i32, i32) {
    %c0_i32 = arith.constant 0 : i32
    %c0_i32_0 = arith.constant 0 : i32
    %c0_i32_1 = arith.constant 0 : i32
    return %c0_i32, %c0_i32_0 : i32, i32
  }
  func.func @transform_3(%arg0: i32) -> (i32, i32) {
    %c0_i32 = arith.constant 0 : i32
    %c0_i32_0 = arith.constant 0 : i32
    %c0_i32_1 = arith.constant 0 : i32
    return %c0_i32, %c0_i32_0 : i32, i32
  }
  func.func @transform_4(%arg0: i32) -> (i32, i32) {
    %c0_i32 = arith.constant 0 : i32
    %c0_i32_0 = arith.constant 0 : i32
    %c0_i32_1 = arith.constant 0 : i32
    return %c0_i32, %c0_i32_0 : i32, i32
  }
  func.func @transform_5(%arg0: i32) -> (i32, i32) {
    %c0_i32 = arith.constant 0 : i32
    %c0_i32_0 = arith.constant 0 : i32
    %c0_i32_1 = arith.constant 0 : i32
    return %c0_i32, %c0_i32_0 : i32, i32
  }
  func.func @transform_6(%arg0: i32) -> (i32, i32) {
    %c0_i32 = arith.constant 0 : i32
    %c0_i32_0 = arith.constant 0 : i32
    %c0_i32_1 = arith.constant 0 : i32
    return %c0_i32, %c0_i32_0 : i32, i32
  }
  func.func @transform_7(%arg0: i32) -> (i32, i32) {
    %c0_i32 = arith.constant 0 : i32
    %c0_i32_0 = arith.constant 0 : i32
    %c0_i32_1 = arith.constant 0 : i32
    return %c0_i32, %c0_i32_0 : i32, i32
  }
  func.func @transform_8(%arg0: i32) -> (i32, i32) {
    %c0_i32 = arith.constant 0 : i32
    %c0_i32_0 = arith.constant 0 : i32
    %c0_i32_1 = arith.constant 0 : i32
    return %c0_i32, %c0_i32_0 : i32, i32
  }
  func.func @transform_9(%arg0: i32) -> (i32, i32) {
    %c0_i32 = arith.constant 0 : i32
    %c0_i32_0 = arith.constant 0 : i32
    return %arg0, %c0_i32 : i32, i32
  }
}

</mosaic_0001>

<bundles_post_ra>
// kernel: naive_classifier_forward.1
= control target key start
LH: loop header
LB: loop body
LE: loop exit
PB: predicated region body
PF: predicated region fallthrough
CT: control target
= control target key end

     0   :  { %14 = vsyncpa [#allocation3], 0  ;;  %s1210_s0 = inlined_call_operand.vmem [shape: f32[16,32], index: 0, kind: input, shape index: {}]   ;;  %s1211_s1 = inlined_call_operand.vmem [shape: bf16[32,256], index: 1, kind: input, shape index: {}]   ;;  %s1212_s2 = inlined_call_operand.vmem [shape: f32[1,256], index: 2, kind: input, shape index: {}]   ;;  %s1213_s3 = inlined_call_operand.hbm [shape: bf16[256,256], index: 3, kind: input, shape index: {}]   ;;  %s1214_s4 = inlined_call_operand.hbm [shape: f32[1,256], index: 4, kind: input, shape index: {}]   ;;  %s1215_s5 = inlined_call_operand.hbm [shape: bf16[256,128], index: 5, kind: input, shape index: {}]   ;;  %s1216_s6 = inlined_call_operand.hbm [shape: f32[1,128], index: 6, kind: input, shape index: {}]   ;;  %s1217_s7 = inlined_call_operand.hbm [shape: bf16[128,128], index: 7, kind: input, shape index: {}]   ;;  %s1218_s8 = inlined_call_operand.hbm [shape: f32[1,128], index: 8, kind: input, shape index: {}]   ;;  %s1219_s9 = inlined_call_operand.vmem [shape: bf16[16,128], index: 9, kind: output, shape index: {}]  }
   0x1   :  { %15 = vsyncpa [#allocation5], 0 }
   0x2   :  { %16 = vsyncpa [#allocation8], 0 }
   0x3   :  { %17 = vsyncpa [#allocation11], 0  ;;  %s1105_s30 = smov [#allocation4]   ;;  %s1106_s11 = smov [#allocation7]  }
   0x4   :  { %s42_s10 = sshll.u32 %s1105_s30, 4  ;;  %s64_s12 = sshll.u32 %s1106_s11, 4  ;;  %s43_s10 = int_to_ptr.vmem [resolvable:$true] %s42_s10  ;;  %s65_s12 = int_to_ptr.vmem [resolvable:$true] %s64_s12 }
   0x5   :  { %s985_s13 = scalar_lea.vmem %s43_s10, 32  ;;  %p990_p1 = scmp.lt.s32.totalorder %s43_s10, %s43_s10 }
   0x6   :  { %p986_p0 = scmp.ne.s32.totalorder %s43_s10, %s985_s13  ;;  %p991_p2 = scmp.lt.s32.totalorder %s985_s13, %s985_s13 }
   0x8   :  { %p992_p3 = por %p991_p2, %p990_p1 }
   0xa   :  { %p993_p4 = pnand %p992_p3, %p986_p0 }
   0xc   :  { %996 = shalt.err (!%p993_p4)
}
   0xd   :  { %45 = dma.hbm_to_vmem [thread:$0]  %s1214_s4, 32, %s43_s10, [#allocation5]  }
   0xe   :  { %s1005_s16 = scalar_lea.vmem %s65_s12, 16  ;;  %s1009_s17 = scalar_lea.vmem %s65_s12, 32 }
   0xf   :  { %p1006_p5 = scmp.ne.s32.totalorder %s65_s12, %s1005_s16  ;;  %p1010_p6 = scmp.lt.s32.totalorder %s65_s12, %s65_s12 }
  0x10   :  { %p1011_p7 = scmp.lt.s32.totalorder %s1009_s17, %s1005_s16 }
  0x12   :  { %p1012_p8 = por %p1011_p7, %p1010_p6 }
  0x14   :  { %p1013_p9 = pnand %p1012_p8, %p1006_p5 }
  0x16   :  { %1016 = shalt.err (!%p1013_p9)
}
  0x17   :  { %67 = dma.hbm_to_vmem [thread:$0]  %s1216_s6, 16, %s65_s12, [#allocation8]  }
  0x18   :  { %s1107_s20 = smov [#allocation2]  }
  0x19   :  { %s29_s21 = sshll.u32 %s1107_s20, 4  ;;  %s30_s21 = int_to_ptr.vmem [resolvable:$true] %s29_s21 }
  0x1a   :  { %s1025_s22 = scalar_lea.vmem %s30_s21, 4096  ;;  %p1030_p11 = scmp.lt.s32.totalorder %s30_s21, %s30_s21 }
  0x1b   :  { %p1026_p10 = scmp.ne.s32.totalorder %s30_s21, %s1025_s22  ;;  %p1031_p12 = scmp.lt.s32.totalorder %s1025_s22, %s1025_s22 }
  0x1d   :  { %p1032_p13 = por %p1031_p12, %p1030_p11 }
  0x1f   :  { %p1033_p0 = pnand %p1032_p13, %p1026_p10 }
  0x21   :  { %1036 = shalt.err (!%p1033_p0)
}
  0x22   :  { %s1108_s4 = smov 128   ;;  %s1109_s23 = smov 8  }
  0x23   :  { %35 = dma.hbm_to_vmem [thread:$0]  %s1213_s3, 4096, %s30_s21, [#allocation3], %s1108_s4, %s1108_s4, %s1109_s23  }
  0x24   :  { %s1110_s26 = smov [#allocation6]  }
  0x25   :  { %s51_s27 = sshll.u32 %s1110_s26, 4  ;;  %s52_s27 = int_to_ptr.vmem [resolvable:$true] %s51_s27 }
  0x26   :  { %s1045_s6 = scalar_lea.vmem %s52_s27, 2048  ;;  %p1050_p2 = scmp.lt.s32.totalorder %s52_s27, %s52_s27 }
  0x27   :  { %p1046_p1 = scmp.ne.s32.totalorder %s52_s27, %s1045_s6  ;;  %p1051_p3 = scmp.lt.s32.totalorder %s1045_s6, %s1045_s6 }
  0x29   :  { %p1052_p4 = por %p1051_p3, %p1050_p2 }
  0x2b   :  { %p1053_p5 = pnand %p1052_p4, %p1046_p1 }
  0x2d   :  { %1056 = shalt.err (!%p1053_p5)
}
  0x2e   :  { %s1111_s28 = smov 64   ;;  %s1112_s29 = smov 4  }
  0x2f   :  { %57 = dma.hbm_to_vmem [thread:$0]  %s1215_s5, 2048, %s52_s27, [#allocation5], %s1111_s28, %s1111_s28, %s1112_s29  }
  0x30   :  { %s1113_s11 = smov [#allocation9]   ;;  %s1114_s13 = smov [#allocation10]  }
  0x31   :  { %s73_s12 = sshll.u32 %s1113_s11, 4  ;;  %s86_s3 = sshll.u32 %s1114_s13, 4  ;;  %s74_s12 = int_to_ptr.vmem [resolvable:$true] %s73_s12  ;;  %s87_s3 = int_to_ptr.vmem [resolvable:$true] %s86_s3 }
  0x32   :  { %s1065_s14 = scalar_lea.vmem %s74_s12, 1024  ;;  %p1070_p7 = scmp.lt.s32.totalorder %s74_s12, %s74_s12 }
  0x33   :  { %p1066_p6 = scmp.ne.s32.totalorder %s74_s12, %s1065_s14  ;;  %p1071_p8 = scmp.lt.s32.totalorder %s1065_s14, %s1065_s14 }
  0x35   :  { %p1072_p9 = por %p1071_p8, %p1070_p7 }
  0x37   :  { %p1073_p10 = pnand %p1072_p9, %p1066_p6 }
  0x39   :  { %1076 = shalt.err (!%p1073_p10)
}
  0x3a   :  { %79 = dma.hbm_to_vmem [thread:$0]  %s1217_s7, 1024, %s74_s12, [#allocation8], %s1111_s28, %s1111_s28, %s1112_s29  }
  0x3b   :  { %s1085_s17 = scalar_lea.vmem %s87_s3, 16  ;;  %s1089_s5 = scalar_lea.vmem %s87_s3, 32 }
  0x3c   :  { %p1086_p11 = scmp.ne.s32.totalorder %s87_s3, %s1085_s17  ;;  %p1090_p12 = scmp.lt.s32.totalorder %s87_s3, %s87_s3 }
  0x3d   :  { %p1091_p13 = scmp.lt.s32.totalorder %s1089_s5, %s1085_s17 }
  0x3f   :  { %p1092_p0 = por %p1091_p13, %p1090_p12 }
  0x41   :  { %p1093_p1 = pnand %p1092_p0, %p1086_p11 }
  0x43   :  { %1096 = shalt.err (!%p1093_p1)
}
  0x44   :  { %89 = dma.hbm_to_vmem [thread:$0]  %s1218_s8, 16, %s87_s3, [#allocation11]  }
  0x45   :  { %1097 = dma.done.wait [#allocation3], 4096  }
  0x46   :  { %1098 = vsyncadd [#allocation3], 4294963200 }
  0x47   :  { %1099 = dma.done.wait [#allocation5], 2080  }
  0x48   :  { %1100 = vsyncadd [#allocation5], 4294965216 }
  0x49   :  { %1101 = dma.done.wait [#allocation8], 1040  }
  0x4a   :  { %1102 = vsyncadd [#allocation8], 4294966256 }
  0x4b   :  { %1103 = dma.done.wait [#allocation11], 16  }
  0x4c   :  { %1104 = vsyncadd [#allocation11], 4294967280  ;;  %v1115_v0 = vmov 0   ;;  %v899_v1 = vld [vmem:[%s1211_s1 + $0x14] ss:$8 sps:$4 sm:$0xff]   ;;  %v109_v5 = vld [vmem:[%s1210_s0] sm:$0xff]  ;;  %v118_v50 = vlaneseq }
  0x4d   :  { %184 = vmatprep.mubr.bf16.mxu0 %v1115_v0  ;;  %v901_v2 = vld [vmem:[%s1211_s1 + $0x10] ss:$8 sps:$4 sm:$0xff]   ;;  %164 = vmatprep.subr.bf16.mxu0 %v899_v1  ;;  %v902_v3 = vld [vmem:[%s1211_s1 + $0x4] ss:$8 sps:$4 sm:$0xff]   ;;  %v904_v4 = vld [vmem:[%s1211_s1] ss:$8 sps:$4 sm:$0xff]  }
  0x4e   :  { %165 = vmatpush1.bf16.msra.mxu0 %v901_v2  ;;  %v110_v6 = vld [vmem:[%s1210_s0 + $0x8] sm:$0xff]  ;;  %v905_v7 = vld [vmem:[#allocation2 + $0x74] ss:$8 sps:$4 sm:$0xff]   ;;  %v907_v8 = vld [vmem:[#allocation2 + $0x70] ss:$8 sps:$4 sm:$0xff]   ;;  %vm148_vm0 = vcmask 261120  }
  0x4f   :  { %166 = vmatprep.subr.bf16.mxu0 %v902_v3  ;;  %v908_v9 = vld [vmem:[#allocation2 + $0x64] ss:$8 sps:$4 sm:$0xff]   ;;  %v111_v10 = vpack.c.bf16 %v110_v6, %v109_v5  ;;  %405 = vmatprep.subr.bf16.mxu1 %v905_v7  ;;  %v910_v11 = vld [vmem:[#allocation2 + $0x60] ss:$8 sps:$4 sm:$0xff]   ;;  %v911_v12 = vld [vmem:[#allocation2 + $0x54] ss:$8 sps:$4 sm:$0xff]  }
  0x50   :  { %406 = vmatpush1.bf16.msra.mxu1 %v907_v8  ;;  %v913_v13 = vld [vmem:[#allocation2 + $0x50] ss:$8 sps:$4 sm:$0xff]   ;;  %v914_v14 = vld [vmem:[#allocation2 + $0x44] ss:$8 sps:$4 sm:$0xff]   ;;  %v916_v15 = vld [vmem:[#allocation2 + $0x40] ss:$8 sps:$4 sm:$0xff]  }
  0x51   :  { %407 = vmatprep.subr.bf16.mxu1 %v908_v9  ;;  %v917_v16 = vld [vmem:[#allocation2 + $0x34] ss:$8 sps:$4 sm:$0xff]   ;;  %v919_v17 = vld [vmem:[#allocation2 + $0x30] ss:$8 sps:$4 sm:$0xff]   ;;  %v920_v18 = vld [vmem:[#allocation2 + $0x24] ss:$8 sps:$4 sm:$0xff]  }
  0x52   :  { %167 = vmatpush1.bf16.msra.mxu0 %v904_v4  ;;  %v922_v19 = vld [vmem:[#allocation2 + $0x20] ss:$8 sps:$4 sm:$0xff]   ;;  %v923_v20 = vld [vmem:[#allocation2 + $0x14] ss:$8 sps:$4 sm:$0xff]   ;;  %v925_v21 = vld [vmem:[#allocation2 + $0x10] ss:$8 sps:$4 sm:$0xff]  }
  0x53   :  { %v926_v22 = vld [vmem:[#allocation2 + $0x4] ss:$8 sps:$4 sm:$0xff]   ;;  %v928_v23 = vld [vmem:[#allocation2] ss:$8 sps:$4 sm:$0xff]   ;;  %v929_v24 = vld [vmem:[#allocation2 + $0xf4] ss:$8 sps:$4 sm:$0xff]  }
  0x54   :  { %408 = vmatpush1.bf16.msra.mxu1 %v910_v11  ;;  %v931_v25 = vld [vmem:[#allocation2 + $0xf0] ss:$8 sps:$4 sm:$0xff]   ;;  %v932_v26 = vld [vmem:[#allocation2 + $0xe4] ss:$8 sps:$4 sm:$0xff]   ;;  %v934_v27 = vld [vmem:[#allocation2 + $0xe0] ss:$8 sps:$4 sm:$0xff]  }
  0x55   :  { %767 = vmatmul.mubr.msk.bf16.vlgmr.msra.gmra.mxu0 %vm148_vm0, %v111_v10  ;;  %409 = vmatprep.subr.bf16.mxu1 %v911_v12  ;;  %v935_v28 = vld [vmem:[#allocation2 + $0xd4] ss:$8 sps:$4 sm:$0xff]   ;;  %v937_v29 = vld [vmem:[#allocation2 + $0xd0] ss:$8 sps:$4 sm:$0xff]   ;;  %v938_v30 = vld [vmem:[#allocation2 + $0xc4] ss:$8 sps:$4 sm:$0xff]  }
  0x56   :  { %v940_v31 = vld [vmem:[#allocation2 + $0xc0] ss:$8 sps:$4 sm:$0xff]   ;;  %v941_v32 = vld [vmem:[#allocation2 + $0xb4] ss:$8 sps:$4 sm:$0xff]   ;;  %v943_v33 = vld [vmem:[#allocation2 + $0xb0] ss:$8 sps:$4 sm:$0xff]  }
  0x57   :  { %v944_v34 = vld [vmem:[#allocation2 + $0xa4] ss:$8 sps:$4 sm:$0xff]   ;;  %v946_v35 = vld [vmem:[#allocation2 + $0xa0] ss:$8 sps:$4 sm:$0xff]   ;;  %v947_v36 = vld [vmem:[#allocation2 + $0x94] ss:$8 sps:$4 sm:$0xff]  }
  0x58   :  { %410 = vmatpush1.bf16.msra.mxu1 %v913_v13  ;;  %v949_v37 = vld [vmem:[#allocation2 + $0x90] ss:$8 sps:$4 sm:$0xff]   ;;  %v950_v38 = vld [vmem:[#allocation2 + $0x84] ss:$8 sps:$4 sm:$0xff]   ;;  %v952_v39 = vld [vmem:[#allocation2 + $0x80] ss:$8 sps:$4 sm:$0xff]  }
  0x59   :  { %411 = vmatprep.subr.bf16.mxu1 %v914_v14  ;;  %v953_v40 = vld [vmem:[#allocation6 + $0x78] sm:$0xff]   ;;  %v955_v42 = vld [vmem:[#allocation6 + $0x70] sm:$0xff]   ;;  %v957_v44 = vld [vmem:[#allocation6 + $0x68] sm:$0xff]   ;;  %v119_v51 = vshrl.u32 %v118_v50, 7  ;;  %v1116_v13 = vmov 0.0   ;;  %vm1117_vm1 = vmmov 0  }
  0x5a   :  { %v954_v41 = vld [vmem:[#allocation6 + $0x38] sm:$0xff]   ;;  %835 = vmatprep.subr.bf16.mxu0 %v953_v40  ;;  %v956_v43 = vld [vmem:[#allocation6 + $0x30] sm:$0xff]   ;;  %v958_v45 = vld [vmem:[#allocation6 + $0x28] sm:$0xff]  }
  0x5b   :  { %836 = vmatpush3.bf16.msra.mxu0 %v954_v41  ;;  %v959_v46 = vld [vmem:[#allocation6 + $0x60] sm:$0xff]   ;;  %v961_v48 = vld [vmem:[#allocation6 + $0x58] sm:$0xff]   ;;  %v124_v52 = vsub.s32 1, %v119_v51  ;;  %v120_v53 = vsub.s32 0, %v119_v51  ;;  %v963_v7 = vld [vmem:[#allocation6 + $0x50] sm:$0xff]  }
  0x5c   :  { %412 = vmatpush1.bf16.msra.mxu1 %v916_v15  ;;  %837 = vmatprep.subr.bf16.mxu0 %v955_v42  ;;  %v960_v47 = vld [vmem:[#allocation6 + $0x20] sm:$0xff]   ;;  %v962_v49 = vld [vmem:[#allocation6 + $0x18] sm:$0xff]   ;;  %v964_v8 = vld [vmem:[#allocation6 + $0x10] sm:$0xff]  }
  0x5d   :  { %413 = vmatprep.subr.bf16.mxu1 %v917_v16  ;;  %v116_v54 = vld [vmem:[%s1212_s2] sm:$0x3]  ;;  %v965_v9 = vld [vmem:[#allocation6 + $0x48] sm:$0xff]   ;;  %v967_v11 = vld [vmem:[#allocation6 + $0x40] sm:$0xff]  }
  0x5e   :  { %v125_v56 = vrot.slane %v116_v54, %v124_v52  ;;  %v121_v57 = vrot.slane %v116_v54, %v120_v53  ;;  %v966_v10 = vld [vmem:[#allocation6 + $0x8] sm:$0xff]   ;;  %v968_v12 = vld [vmem:[#allocation6] sm:$0xff]   ;;  %v233_v14 = vld [vmem:[#allocation4] sm:$0x3] }
  0x5f   :  { %838 = vmatpush3.bf16.msra.mxu0 %v956_v43  ;;  %v242_v16 = vrot.slane %v233_v14, %v124_v52  ;;  %v800_v42 = vld [vmem:[#allocation7] ss:$0 sm:$0xff]  ;;  %v817_v52 = vld [vmem:[#allocation10] ss:$0 sm:$0xff] }
  0x60   :  { %414 = vmatpush1.bf16.msra.mxu1 %v919_v17  ;;  %839 = vmatprep.subr.bf16.mxu0 %v957_v44  ;;  %v238_v17 = vrot.slane %v233_v14, %v120_v53 }
  0x61   :  { %415 = vmatprep.subr.bf16.mxu1 %v920_v18 }
  0x63   :  { %840 = vmatpush3.bf16.msra.mxu0 %v958_v45 }
  0x64   :  { %416 = vmatpush1.bf16.msra.mxu1 %v922_v19  ;;  %841 = vmatprep.subr.bf16.mxu0 %v959_v46 }
  0x65   :  { %417 = vmatprep.subr.bf16.mxu1 %v923_v20 }
  0x67   :  { %842 = vmatpush3.bf16.msra.mxu0 %v960_v47 }
  0x68   :  { %418 = vmatpush1.bf16.msra.mxu1 %v925_v21  ;;  %843 = vmatprep.subr.bf16.mxu0 %v961_v48 }
  0x69   :  { %419 = vmatprep.subr.bf16.mxu1 %v926_v22 }
  0x6b   :  { %844 = vmatpush3.bf16.msra.mxu0 %v962_v49 }
  0x6c   :  { %420 = vmatpush1.bf16.msra.mxu1 %v928_v23  ;;  %845 = vmatprep.subr.bf16.mxu0 %v963_v7 }
  0x6d   :  { %421 = vmatprep.subr.bf16.mxu1 %v929_v24 }
  0x6f   :  { %846 = vmatpush3.bf16.msra.mxu0 %v964_v8 }
  0x70   :  { %422 = vmatpush2.bf16.msra.mxu1 %v931_v25  ;;  %847 = vmatprep.subr.bf16.mxu0 %v965_v9 }
  0x71   :  { %423 = vmatprep.subr.bf16.mxu1 %v932_v26 }
  0x73   :  { %848 = vmatpush3.bf16.msra.mxu0 %v966_v10 }
  0x74   :  { %424 = vmatpush2.bf16.msra.mxu1 %v934_v27  ;;  %849 = vmatprep.subr.bf16.mxu0 %v967_v11 }
  0x75   :  { %425 = vmatprep.subr.bf16.mxu1 %v935_v28 }
  0x77   :  { %850 = vmatpush3.bf16.msra.mxu0 %v968_v12 }
  0x78   :  { %426 = vmatpush2.bf16.msra.mxu1 %v937_v29  ;;  %866 = vmatprep.subr.bf16.mxu0 %v1116_v13 }
  0x79   :  { %427 = vmatprep.subr.bf16.mxu1 %v938_v30  ;;  %v969_v30 = vld [vmem:[#allocation9 + $0x38] sm:$0xff]  }
  0x7c   :  { %428 = vmatpush2.bf16.msra.mxu1 %v940_v31 }
  0x7d   :  { %429 = vmatprep.subr.bf16.mxu1 %v941_v32  ;;  %v970_v32 = vld [vmem:[#allocation9 + $0x30] sm:$0xff]  }
  0x80   :  { %430 = vmatpush2.bf16.msra.mxu1 %v943_v33  ;;  %v971_v33 = vld [vmem:[#allocation9 + $0x28] sm:$0xff]  }
  0x81   :  { %431 = vmatprep.subr.bf16.mxu1 %v944_v34  ;;  %v972_v34 = vld [vmem:[#allocation9 + $0x20] sm:$0xff]  }
  0x84   :  { %432 = vmatpush2.bf16.msra.mxu1 %v946_v35  ;;  %v973_v35 = vld [vmem:[#allocation9 + $0x18] sm:$0xff]  }
  0x85   :  { %433 = vmatprep.subr.bf16.mxu1 %v947_v36  ;;  %v974_v36 = vld [vmem:[#allocation9 + $0x10] sm:$0xff]  }
  0x88   :  { %434 = vmatpush2.bf16.msra.mxu1 %v949_v37  ;;  %v975_v37 = vld [vmem:[#allocation9 + $0x8] sm:$0xff]  }
  0x89   :  { %435 = vmatprep.subr.bf16.mxu1 %v950_v38  ;;  %v976_v38 = vld [vmem:[#allocation9] sm:$0xff]  }
  0x8c   :  { %436 = vmatpush2.bf16.msra.mxu1 %v952_v39 }
 0x115   :  { %v186_v55 = vpop.f32.mrf.mxu0 }
 0x116   :  { %v187_v62 = vadd.f32 %v186_v55, %v121_v57 }
 0x117   :  { %v188_v58 = vpop.f32.mrf.mxu0 }
 0x118   :  { %v189_v60 = vadd.f32 %v188_v58, %v125_v56  ;;  %v195_v4 = vmax.f32 %v187_v62, 0.0 }
 0x119   :  { %v190_v59 = vpop.f32.mrf.mxu0 }
 0x11a   :  { %v191_v61 = vadd.f32 %v190_v59, %v121_v57  ;;  %v196_v2 = vmax.f32 %v189_v60, 0.0 }
 0x11b   :  { %v192_v63 = vpop.f32.mrf.mxu0 }
 0x11c   :  { %v193_v0 = vadd.f32 %v192_v63, %v125_v56  ;;  %v197_v1 = vmax.f32 %v191_v61, 0.0 }
 0x11e   :  { %v198_v3 = vmax.f32 %v193_v0, 0.0  ;;  %v199_v6 = vpack.c.bf16 %v197_v1, %v195_v4 }
 0x120   :  { %v200_v5 = vpack.c.bf16 %v198_v3, %v196_v2 }
 0x122   :  { %437 = vmatprep.mubr.bf16.mxu1 %v200_v5 }
 0x123   :  { %438 = vmatmul.mubr.bf16.vlgmr.msra.gmra.mxu1 %v199_v6 }
 0x1e3   :  { %v439_v15 = vpop.f32.mrf.mxu1 }
 0x1e4   :  { %v440_v22 = vadd.f32 %v439_v15, %v238_v17 }
 0x1e5   :  { %v441_v18 = vpop.f32.mrf.mxu1 }
 0x1e6   :  { %v442_v20 = vadd.f32 %v441_v18, %v242_v16  ;;  %v448_v28 = vmax.f32 %v440_v22, 0.0 }
 0x1e7   :  { %v443_v19 = vpop.f32.mrf.mxu1 }
 0x1e8   :  { %v444_v21 = vadd.f32 %v443_v19, %v238_v17  ;;  %v449_v26 = vmax.f32 %v442_v20, 0.0 }
 0x1e9   :  { %v445_v23 = vpop.f32.mrf.mxu1 }
 0x1ea   :  { %v446_v24 = vadd.f32 %v445_v23, %v242_v16  ;;  %v450_v25 = vmax.f32 %v444_v21, 0.0 }
 0x1ec   :  { %v451_v27 = vmax.f32 %v446_v24, 0.0  ;;  %v452_v31 = vpack.c.bf16 %v450_v25, %v448_v28 }
 0x1ee   :  { %v453_v29 = vpack.c.bf16 %v451_v27, %v449_v26 }
 0x1f0   :  { %621 = vmatprep.mubr.bf16.mxu0 %v453_v29 }
 0x1f1   :  { %622 = vmatmul.mubr.bf16.vlgmr.msra.gmra.mxu0 %v452_v31 }
 0x1f2   :  { %867 = vmatpush3.bf16.msra.mxu0 %v969_v30  ;;  %882 = vmatprep.mubr.msk.bf16.mxu0 %vm1117_vm1, %v1116_v13 }
 0x1f3   :  { %868 = vmatprep.subr.bf16.mxu0 %v1116_v13 }
 0x1f6   :  { %869 = vmatpush3.bf16.msra.mxu0 %v970_v32 }
 0x1f7   :  { %870 = vmatprep.subr.bf16.mxu0 %v1116_v13 }
 0x1fa   :  { %871 = vmatpush3.bf16.msra.mxu0 %v971_v33 }
 0x1fb   :  { %872 = vmatprep.subr.bf16.mxu0 %v1116_v13 }
 0x1fe   :  { %873 = vmatpush3.bf16.msra.mxu0 %v972_v34 }
 0x1ff   :  { %874 = vmatprep.subr.bf16.mxu0 %v1116_v13 }
 0x202   :  { %875 = vmatpush3.bf16.msra.mxu0 %v973_v35 }
 0x203   :  { %876 = vmatprep.subr.bf16.mxu0 %v1116_v13 }
 0x206   :  { %877 = vmatpush3.bf16.msra.mxu0 %v974_v36 }
 0x207   :  { %878 = vmatprep.subr.bf16.mxu0 %v1116_v13 }
 0x20a   :  { %879 = vmatpush3.bf16.msra.mxu0 %v975_v37 }
 0x20b   :  { %880 = vmatprep.subr.bf16.mxu0 %v1116_v13 }
 0x20e   :  { %881 = vmatpush3.bf16.msra.mxu0 %v976_v38 }
 0x2b1   :  { %v851_v39 = vpop.f32.mrf.mxu0 }
 0x2b3   :  { %v852_v40 = vpop.f32.mrf.mxu0 }
 0x2b4   :  { %v853_v41 = vadd.f32 %v852_v40, %v851_v39 }
 0x2b5   :  { %v854_v43 = vpop.f32.mrf.mxu0 }
 0x2b6   :  { %v624_v45 = vadd.f32 %v853_v41, %v800_v42 }
 0x2b7   :  { %v855_v44 = vpop.f32.mrf.mxu0 }
 0x2b8   :  { %v856_v46 = vadd.f32 %v855_v44, %v854_v43  ;;  %v630_v48 = vmax.f32 %v624_v45, 0.0 }
 0x2ba   :  { %v627_v47 = vadd.f32 %v856_v46, %v800_v42 }
 0x2bc   :  { %v631_v49 = vmax.f32 %v627_v47, 0.0 }
 0x2be   :  { %v632_v50 = vpack.c.bf16 %v631_v49, %v630_v48 }
 0x2c0   :  { %883 = vmatmul.mubr.bf16.vlgmr.msra.gmra.mxu0 %v632_v50 }
 0x380   :  { %v738_v51 = vpop.f32.mrf.mxu0 }
 0x381   :  { %v739_v55 = vadd.f32 %v817_v52, %v738_v51 }
 0x382   :  { %v884_v53 = vpop.f32.mrf.mxu0 }
 0x384   :  { %v741_v54 = vpop.f32.mrf.mxu0 }
 0x385   :  { %v742_v56 = vadd.f32 %v817_v52, %v741_v54 }
 0x386   :  { %v885_v57 = vpop.f32.mrf.mxu0 }
 0x387   :  { %v833_v58 = vpack.c.bf16 %v742_v56, %v739_v55 }
 0x389   :  { %834 = vst [vmem:[%s1219_s9] sm:$0xff] %v833_v58  }
 0x38a   :  { %759 = vsyncpa [#allocation3], 1 }
 0x38b   :  { %760 = vsyncpa [#allocation5], 1 }
 0x38c   :  { %761 = vsyncpa [#allocation8], 1 }
 0x38d   :  { %762 = vsyncpa [#allocation11], 1 }

</bundles_post_ra>
